<compile_context>
chip_gen: v6e
topology: v6e:2x2x1
jax: 0.10.0
libtpu: 0.0.40
codegen_flags: <defaults>
</compile_context>

<pallas_src>
import functools

import jax
import jax.numpy as jnp
from jax.experimental import pallas as pl
from jax.experimental.pallas import tpu as pltpu


def _dia_conv1d_body(x_ref, halo_ref, w_ref, b_ref, o_ref, *, compute_dtype):
    # x_ref:    (TL, D)   sequence tile of one batch element (input dtype)
    # halo_ref: (2, D)    [row (t0-1) mod L, row (t0+TL) mod L]; None if single tile
    # w_ref:    (K, D, D) per-tap weights W[k, ci, co] in compute_dtype
    # b_ref:    (1, D)    bias, f32
    # o_ref:    (TL, D)   output tile
    TL, D = o_ref.shape

    x = x_ref[...]
    # Align each tap's input rows with the output rows via XLU rolls:
    #   left  tap (k=0): output row j reads input row j-1
    #   right tap (k=2): output row j reads input row j+1
    x_left = pltpu.roll(x, shift=1, axis=0)
    x_right = pltpu.roll(x, shift=TL - 1, axis=0)

    if halo_ref is not None:
        # Multi-tile: substitute the two circular-halo rows (two (TL,1)-masked
        # row substitutions; no full-tile mask pair, no extra halo matmul —
        # the halo rows flow through the main matmuls below).
        halo = halo_ref[...]
        row = jax.lax.broadcasted_iota(jnp.int32, (TL, 1), 0)
        x_left = jnp.where(row == 0, halo[0:1, :], x_left)
        x_right = jnp.where(row == TL - 1, halo[1:2, :], x_right)

    cd = compute_dtype
    acc = jnp.dot(x_left.astype(cd), w_ref[0], preferred_element_type=jnp.float32)
    acc = acc + jnp.dot(x.astype(cd), w_ref[1], preferred_element_type=jnp.float32)
    acc = acc + jnp.dot(x_right.astype(cd), w_ref[2], preferred_element_type=jnp.float32)
    acc = acc + b_ref[...]                      # bias + ReLU fused in the epilogue
    o_ref[...] = jnp.maximum(acc, 0.0).astype(o_ref.dtype)


def _pick_seq_tile(L, D, w_bytes, *, budget_bytes=12 << 20, target=2048):
    """Largest divisor of L that is a multiple of 8 (or == L), fits the
    per-grid-step VMEM budget and is <= target."""
    # Per-step estimate: double-buffered f32 in/out tiles + in-kernel
    # intermediates (rolled copies, casts, f32 accumulator) + the
    # single-buffered weight/bias block.
    fixed = 3 * D * D * w_bytes + 8 * D * 4
    per_row = 32 * D                      # ~8 f32-equivalent copies of a row
    if budget_bytes > fixed + 8 * per_row:
        cap = max(8, min(target, (budget_bytes - fixed) // per_row))
    else:
        cap = 8
    for tl in range(min(L, cap), 0, -1):
        if L % tl == 0 and (tl % 8 == 0 or tl == L):
            return tl
    # Fallback (prime-ish L with no multiple-of-8 divisor): one full tile.
    # The wrapper raises vmem_limit_bytes if this overshoots the default.
    return L


def dia_conv1d(x, w, b, *, seq_tile=None, compute_dtype=jnp.bfloat16):
    """Circular Conv1d(K=3, padding=1) + bias + ReLU, channels-last.

    x: (B, L, D); w: (K, D, D) with w[k, ci, co]; b: (D,).  Matches DiaConv1D
    in eval mode (Dropout is identity).  Matmuls run in `compute_dtype`
    (bf16 by default, f32 accumulation); pass jnp.float32 for bit-tight output.
    """
    B, L, D = x.shape
    K = w.shape[0]
    assert K == 3 and w.shape == (K, D, D), "kernel supports K=3, padding=1 only"

    w_bytes = jnp.dtype(compute_dtype).itemsize
    TL = seq_tile if seq_tile is not None else _pick_seq_tile(L, D, w_bytes)
    assert L % TL == 0, (L, TL)
    n_tiles = L // TL
    multi_tile = n_tiles > 1

    w_c = w.astype(compute_dtype)                 # (K, D, D), cast once
    b2 = b.reshape(1, D).astype(jnp.float32)

    # Grid-invariant blocks: fetched once, single VMEM buffer.
    const_kw = dict(pipeline_mode=pl.Buffered(buffer_count=1))

    in_specs = [pl.BlockSpec((None, TL, D), lambda bi, ti: (bi, ti, 0))]
    operands = [x]
    if multi_tile:
        # Two circular-halo rows per tile (gathered in the wrapper; negligible
        # HBM traffic) instead of a fully padded HBM copy of x.
        starts = jnp.arange(n_tiles) * TL
        left = x[:, (starts - 1) % L, :]                    # (B, n_tiles, D)
        right = x[:, (starts + TL) % L, :]                  # (B, n_tiles, D)
        halo = jnp.stack([left, right], axis=2)             # (B, n_tiles, 2, D)
        in_specs.append(
            pl.BlockSpec((None, None, 2, D), lambda bi, ti: (bi, ti, 0, 0)))
        operands.append(halo)
    in_specs += [
        pl.BlockSpec((K, D, D), lambda bi, ti: (0, 0, 0), **const_kw),
        pl.BlockSpec((1, D), lambda bi, ti: (0, 0), **const_kw),
    ]
    operands += [w_c, b2]

    body = functools.partial(_dia_conv1d_body, compute_dtype=compute_dtype)
    if multi_tile:
        def kernel(x_ref, halo_ref, w_ref, b_ref, o_ref):
            body(x_ref, halo_ref, w_ref, b_ref, o_ref)
    else:
        def kernel(x_ref, w_ref, b_ref, o_ref):
            body(x_ref, None, w_ref, b_ref, o_ref)

    # Raise the scoped VMEM limit only if the estimate exceeds the smallest
    # default (v5e: 16 MiB); keep headroom under v7x's 64 MiB physical VMEM.
    est = (4 * TL * D * x.dtype.itemsize          # x/out tiles, double-buffered
           + K * D * D * w_bytes                  # single-buffered weights
           + 10 * TL * D * 4                      # in-kernel intermediates
           + (1 << 20))
    vmem_limit = None
    if est > (16 << 20):
        vmem_limit = int(min(max(est, 32 << 20), 60 << 20))

    return pl.pallas_call(
        kernel,
        out_shape=jax.ShapeDtypeStruct((B, L, D), x.dtype),
        grid_spec=pltpu.PrefetchScalarGridSpec(
            num_scalar_prefetch=0,
            grid=(B, n_tiles),
            in_specs=in_specs,
            out_specs=pl.BlockSpec((None, TL, D), lambda bi, ti: (bi, ti, 0)),
        ),
        compiler_params=pltpu.CompilerParams(
            dimension_semantics=("parallel", "parallel"),
            vmem_limit_bytes=vmem_limit),
    )(*operands)


def reference(x, w, b):
    """Pure-JAX reference mirroring the PyTorch forward (eval mode)."""
    B, L, D = x.shape
    K = w.shape[0]
    pad = 1
    x_pad = jnp.concatenate([x[:, L - pad:, :], x, x[:, :pad, :]], axis=1)
    y = jnp.broadcast_to(b[None, None, :], (B, L, D)).astype(jnp.float32)
    for k in range(K):
        y = y + jnp.einsum('bld,de->ble', x_pad[:, k:k + L, :], w[k])
    return jnp.maximum(y, 0.0)


if __name__ == "__main__":
    # Small shapes consistent with the module: batch=2, seq=16, d_model=32, K=3.
    B, L, d_model, K = 2, 16, 32, 3

    key = jax.random.PRNGKey(0)
    kx, kw, kb = jax.random.split(key, 3)

    x = jax.random.normal(kx, (B, L, d_model), dtype=jnp.float32)
    fan_in = d_model * K
    bound = 1.0 / float(jnp.sqrt(fan_in))
    # Parameters stored directly in matmul layout W[k, ci, co] (== torch
    # conv.weight[co, ci, k] permuted), bias (D,).
    w = jax.random.uniform(kw, (K, d_model, d_model), dtype=jnp.float32,
                           minval=-bound, maxval=bound)
    b = jax.random.uniform(kb, (d_model,), dtype=jnp.float32,
                           minval=-bound, maxval=bound)

    ref = reference(x, w, b)

    # 1) f32 compute, single sequence tile (halo path statically removed).
    out1 = jax.block_until_ready(dia_conv1d(x, w, b, compute_dtype=jnp.float32))
    assert out1.shape == (B, L, d_model), out1.shape
    assert jnp.allclose(out1, ref, atol=1e-5, rtol=1e-5), "f32 single-tile mismatch"

    # 2) f32 compute, multi-tile (exercises the circular-halo fixup path).
    out2 = jax.block_until_ready(
        dia_conv1d(x, w, b, seq_tile=8, compute_dtype=jnp.float32))
    assert jnp.allclose(out2, ref, atol=1e-5, rtol=1e-5), "f32 multi-tile mismatch"

    # 3) Default bf16 MXU inputs with f32 accumulation, multi-tile.
    out3 = jax.block_until_ready(dia_conv1d(x, w, b, seq_tile=8))
    assert jnp.allclose(out3, ref, atol=5e-2, rtol=5e-2), "bf16 mismatch"

    print("KERNEL_OK")
</pallas_src>

<mosaic_0001>
module attributes {stable_mosaic.version = 11 : i64} {
  func.func @kernel(%arg0: i32, %arg1: i32, %arg2: memref<1x16x32xf32, #tpu.memory_space<vmem>>, %arg3: memref<3x32x32xf32, #tpu.memory_space<vmem>>, %arg4: memref<1x32xf32, #tpu.memory_space<vmem>>, %arg5: memref<1x16x32xf32, #tpu.memory_space<vmem>>) attributes {dimension_semantics = [#tpu.dimension_semantics<parallel>, #tpu.dimension_semantics<parallel>], iteration_bounds = array<i64: 2, 1>, scalar_prefetch = 0 : i64, scratch_operands = 0 : i64, tpu.core_type = #tpu.core_type<tc>, window_params = [{transform_indices = @transform_0, window_bounds = array<i64: 1, 16, 32>}, {pipeline_mode = #tpu.pipeline_mode<synchronous>, transform_indices = @transform_1, window_bounds = array<i64: 3, 32, 32>}, {pipeline_mode = #tpu.pipeline_mode<synchronous>, transform_indices = @transform_2, window_bounds = array<i64: 1, 32>}, {transform_indices = @transform_3, window_bounds = array<i64: 1, 16, 32>}]} {
    %c0 = arith.constant 0 : index
    %c0_0 = arith.constant 0 : index
    %c0_1 = arith.constant 0 : index
    %0 = vector.load %arg2[%c0, %c0_0, %c0_1] : memref<1x16x32xf32, #tpu.memory_space<vmem>>, vector<1x16x32xf32>
    %1 = vector.shape_cast %0 : vector<1x16x32xf32> to vector<16x32xf32>
    %c1_i32 = arith.constant 1 : i32
    %2 = tpu.dynamic_rotate %1 by %c1_i32 dim 0 : vector<16x32xf32>, i32 -> vector<16x32xf32>
    %c15_i32 = arith.constant 15 : i32
    %3 = tpu.dynamic_rotate %1 by %c15_i32 dim 0 : vector<16x32xf32>, i32 -> vector<16x32xf32>
    %c0_2 = arith.constant 0 : index
    %c0_3 = arith.constant 0 : index
    %c0_4 = arith.constant 0 : index
    %4 = vector.load %arg3[%c0_2, %c0_3, %c0_4] : memref<3x32x32xf32, #tpu.memory_space<vmem>>, vector<1x32x32xf32>
    %5 = vector.shape_cast %4 : vector<1x32x32xf32> to vector<32x32xf32>
    %cst = arith.constant dense<0.000000e+00> : vector<16x32xf32>
    %6 = tpu.matmul %2, %5, %cst {dimension_numbers = #tpu.dot_dimension_numbers<[1], [0], [0], [1], [0, 0, 1, 1], [], []>} : vector<16x32xf32>, vector<32x32xf32>, vector<16x32xf32> -> vector<16x32xf32>
    %c1 = arith.constant 1 : index
    %c0_5 = arith.constant 0 : index
    %c0_6 = arith.constant 0 : index
    %7 = vector.load %arg3[%c1, %c0_5, %c0_6] : memref<3x32x32xf32, #tpu.memory_space<vmem>>, vector<1x32x32xf32>
    %8 = vector.shape_cast %7 : vector<1x32x32xf32> to vector<32x32xf32>
    %cst_7 = arith.constant dense<0.000000e+00> : vector<16x32xf32>
    %9 = tpu.matmul %1, %8, %cst_7 {dimension_numbers = #tpu.dot_dimension_numbers<[1], [0], [0], [1], [0, 0, 1, 1], [], []>} : vector<16x32xf32>, vector<32x32xf32>, vector<16x32xf32> -> vector<16x32xf32>
    %10 = arith.addf %6, %9 : vector<16x32xf32>
    %c2 = arith.constant 2 : index
    %c0_8 = arith.constant 0 : index
    %c0_9 = arith.constant 0 : index
    %11 = vector.load %arg3[%c2, %c0_8, %c0_9] : memref<3x32x32xf32, #tpu.memory_space<vmem>>, vector<1x32x32xf32>
    %12 = vector.shape_cast %11 : vector<1x32x32xf32> to vector<32x32xf32>
    %cst_10 = arith.constant dense<0.000000e+00> : vector<16x32xf32>
    %13 = tpu.matmul %3, %12, %cst_10 {dimension_numbers = #tpu.dot_dimension_numbers<[1], [0], [0], [1], [0, 0, 1, 1], [], []>} : vector<16x32xf32>, vector<32x32xf32>, vector<16x32xf32> -> vector<16x32xf32>
    %14 = arith.addf %10, %13 : vector<16x32xf32>
    %c0_11 = arith.constant 0 : index
    %c0_12 = arith.constant 0 : index
    %15 = vector.load %arg4[%c0_11, %c0_12] : memref<1x32xf32, #tpu.memory_space<vmem>>, vector<1x32xf32>
    %16 = vector.broadcast %15 : vector<1x32xf32> to vector<16x32xf32>
    %17 = arith.addf %14, %16 : vector<16x32xf32>
    %cst_13 = arith.constant 0.000000e+00 : f32
    %18 = vector.broadcast %cst_13 : f32 to vector<16x32xf32>
    %19 = arith.maximumf %17, %18 : vector<16x32xf32>
    %c0_14 = arith.constant 0 : index
    %c0_15 = arith.constant 0 : index
    %c0_16 = arith.constant 0 : index
    %20 = vector.load %arg5[%c0_14, %c0_15, %c0_16] : memref<1x16x32xf32, #tpu.memory_space<vmem>>, vector<1x16x32xf32>
    %21 = vector.shape_cast %20 : vector<1x16x32xf32> to vector<16x32xf32>
    %22 = vector.shape_cast %19 : vector<16x32xf32> to vector<1x16x32xf32>
    tpu.vector_store %arg5[%c0_14, %c0_15, %c0_16], %22 {strides = array<i32>} : memref<1x16x32xf32, #tpu.memory_space<vmem>>, vector<1x16x32xf32>,
    return
  }
  func.func @transform_0(%arg0: i32, %arg1: i32) -> (i32, i32, i32) {
    %c0_i32 = arith.constant 0 : i32
    %c0_i32_0 = arith.constant 0 : i32
    return %arg0, %arg1, %c0_i32 : i32, i32, i32
  }
  func.func @transform_1(%arg0: i32, %arg1: i32) -> (i32, i32, i32) {
    %c0_i32 = arith.constant 0 : i32
    %c0_i32_0 = arith.constant 0 : i32
    %c0_i32_1 = arith.constant 0 : i32
    %c0_i32_2 = arith.constant 0 : i32
    return %c0_i32, %c0_i32_0, %c0_i32_1 : i32, i32, i32
  }
  func.func @transform_2(%arg0: i32, %arg1: i32) -> (i32, i32) {
    %c0_i32 = arith.constant 0 : i32
    %c0_i32_0 = arith.constant 0 : i32
    %c0_i32_1 = arith.constant 0 : i32
    return %c0_i32, %c0_i32_0 : i32, i32
  }
  func.func @transform_3(%arg0: i32, %arg1: i32) -> (i32, i32, i32) {
    %c0_i32 = arith.constant 0 : i32
    %c0_i32_0 = arith.constant 0 : i32
    return %arg0, %arg1, %c0_i32 : i32, i32, i32
  }
}

</mosaic_0001>

<bundles_post_ra>
// kernel: tpu_custom_call.1
= control target key start
LH: loop header
LB: loop body
LE: loop exit
PB: predicated region body
PF: predicated region fallthrough
CT: control target
= control target key end

     0   :  { %8 = vsyncpa [#allocation3], 0  ;;  %s1151_s0 = inlined_call_operand.hbm [shape: f32[2,16,32], index: 0, kind: input, shape index: {}]   ;;  %s1152_s1 = inlined_call_operand.hbm [shape: f32[3,32,32], index: 1, kind: input, shape index: {}]   ;;  %s1153_s2 = inlined_call_operand.vmem [shape: f32[1,32], index: 2, kind: input, shape index: {}]   ;;  %s1154_s3 = inlined_call_operand.hbm [shape: f32[2,16,32], index: 3, kind: output, shape index: {}]  }
   0x1   :  { %10 = vsyncpa [#allocation3 + $0x1], 0 }
   0x2   :  { %11 = vsyncpa [#allocation6], 0 }
   0x3   :  { %12 = vsyncpa [#allocation4], 0 }
   0x4   :  { %14 = vsyncpa [#allocation4 + $0x1], 0  ;;  %s945_s12 = smov 0   ;;  %s947_s13 = smov 0  }
   0x5   :  { %s949_s14 = smov 0   ;;  %s951_s15 = smov 0  }
   0x6   :  { %s953_s16 = smov 0   ;;  %s955_s17 = smov 0  }
   0x7 LB: > { %s624_s18 = sadd.s32 4294967295, %s916_s17   ;;  %s625_s19 = sadd.s32 4294967294, %s916_s17   ;;  %s916_s17 = sphi %s955_s17, %s20_s17   ;;  %s912_s16 = sphi %s953_s16, %s1176_s16   ;;  %s908_s15 = sphi %s951_s15, %s1175_s15   ;;  %s904_s14 = sphi %s949_s14, %s1174_s14   ;;  %s900_s13 = sphi %s947_s13, %s1173_s13   ;;  %s896_s12 = sphi %s945_s12, %s1172_s12  }
   0x8   : > { %p54_p0 = scmp.ne.s32.totalorder %s900_s13, %s896_s12  ;;  %p979_p1 = scmp.eq.s32.totalorder %s624_s18, 0 }
   0x9   : > { %p983_p2 = scmp.eq.s32.totalorder %s624_s18, 1  ;;  %p128_p3 = scmp.eq.s32.totalorder %s625_s19, 1 }
   0xa   : > { %p989_p4 = por %p979_p1, %p54_p0  ;;  %p626_p5 = scmp.ge.s32.totalorder %s916_s17, 1 }
   0xb   : > { %p994_p6 = por %p128_p3, %p54_p0  ;;  %p135_p7 = scmp.lt.s32.totalorder %s916_s17, 3 }
   0xc   : > { %s1160_s22 = scalar_select %p989_p4, 1, 0 }
   0xd   : > { %s1161_s23 = scalar_select %p994_p6, 1, 0 }
   0xe   : > { %p999_p8 = pnand %p626_p5, %p135_p7  ;;  %s918_s25 = smov [#allocation5]  }
   0xf   : > { %s147_s26 = sshll.u32 %s918_s25, 4  ;;  %s32_s28 = sadd.s32 1, %s912_s16  ;;  %s148_s26 = int_to_ptr.vmem [resolvable:$true] %s147_s26 }
  0x10   : > { %p709_p9 = pneg %p999_p8  ;;  %s789_s29 = scalar_lea.vmem %s148_s26, 1536 }
  0x11   : > { %p790_p13 = scmp.ne.s32.totalorder %s148_s26, %s789_s29  ;;  %p797_p5 = scmp.lt.s32.totalorder %s148_s26, %s148_s26 }
  0x12   : > { %p1008_p11 = pnand %p709_p9, %p979_p1  ;;  %p798_p7 = scmp.lt.s32.totalorder %s789_s29, %s789_s29 }
  0x14   : > { %p780_p12 = pneg %p1008_p11  ;;  %p799_p6 = por %p798_p7, %p797_p5 }
  0x16   : > { %p792_p0 = pnand %p790_p13, %p780_p12 }
  0x18   : > { %p793_p3 = pneg %p792_p0 }
  0x1a   : > { %p800_p4 = pnand %p799_p6, %p793_p3 }
  0x1c   : > { %803 = shalt.err (!%p800_p4)
}
  0x1d   : > { %s1156_s30 = smov 128   ;;  %s1157_s4 = smov 8  }
  0x1e   : > { %712 = dma.hbm_to_vmem [thread:$0]  (!%p1008_p11), %s1152_s1, 1536, %s148_s26, [#allocation6], %s1156_s30, %s1156_s30, %s1157_s4  }
  0x1f   : > { %p34_p4 = scmp.ge.s32.totalorder %s32_s28, 2  ;;  %s41_s7 = sadd.s32 1, %s904_s14 }
  0x20   : > { %p48_p6 = scmp.ne.s32.totalorder %s904_s14, %s900_s13  ;;  %p49_p9 = scmp.eq.s32.totalorder %s916_s17, 0 }
  0x21   : > { %s1178_s28 = smov (%p34_p4, %s32_s28), 0  ;;  %p722_p0 = scmp.lt.s32.totalorder %s916_s17, 2 }
  0x22   : > { %p1029_p12 = por %p49_p9, %p48_p6  ;;  %p1035_p13 = por %p983_p2, %p48_p6 }
  0x23   : > { %s36_s10 = ssub.s32 %s912_s16, %s1178_s28  ;;  %s164_s11 = sand.u32 1, %s904_s14  }
  0x24   : > { %p39_p11 = scmp.eq.s32.totalorder %s36_s10, 0  ;;  %s629_s18 = sshll.u32 %s164_s11, 4 }
  0x25   : > { %s648_s25 = sshll.u32 %s912_s16, 8  ;;  %s168_s5 = scalar_lea.vmem [#allocation2], %s629_s18 }
  0x26   : > { %s1044_s19 = scalar_select %p39_p11, %s904_s14, %s41_s7  }
  0x27   : > { %s176_s29 = scalar_lea.hbm %s1151_s0, %s648_s25  ;;  %s177_s6 = sshll.u32 %s168_s5, 4  ;;  %s178_s6 = int_to_ptr.vmem [resolvable:$true] %s177_s6 }
  0x28   : > { %p1052_p2 = pnand %p722_p0, %p1029_p12  ;;  %s165_s30 = scalar_lea.sflag [#allocation3], %s164_s11 }
  0x29   : > { %s817_s10 = scalar_lea.vmem %s178_s6, 256  ;;  %s921_s7 = smov [#allocation2]  }
  0x2a   : > { %p806_p3 = pneg %p1052_p2  ;;  %p818_p5 = scmp.ne.s32.totalorder %s178_s6, %s817_s10 }
  0x2b   : > { %s822_s4 = sshll.u32 %s921_s7, 4  ;;  %s823_s4 = int_to_ptr.vmem [resolvable:$false] %s822_s4 }
  0x2c   : > { %p820_p7 = pnand %p818_p5, %p806_p3  ;;  %s824_s25 = scalar_lea.vmem %s823_s4, 512 }
  0x2d   : > { %p825_p6 = scmp.lt.s32.totalorder %s178_s6, %s823_s4  ;;  %p826_p9 = scmp.lt.s32.totalorder %s824_s25, %s817_s10 }
  0x2e   : > { %p821_p4 = pneg %p820_p7 }
  0x2f   : > { %p827_p11 = por %p826_p9, %p825_p6 }
  0x31   : > { %p828_p10 = pnand %p827_p11, %p821_p4 }
  0x33   : > { %831 = shalt.err (!%p828_p10)
}
  0x34   : > { %s1167_s8 = smov 8   ;;  %s1168_s18 = smov 128  }
  0x35   : > { %716 = dma.hbm_to_vmem [thread:$0]  (!%p1052_p2), %s176_s29, 256, %s178_s6, %s165_s30, %s1168_s18, %s1168_s18, %s1167_s8  }
  0x36   : > { %189 = sbr.rel (%p999_p8) target bundleno = 296 (0x128), region = 32  ;;  %s1066_s11 = sand.u32 (!%p999_p8), 1, %s900_s13  }
  0x37   : > { %s633_s4 = sshll.u32 (!%p999_p8), %s1066_s11, 4  ;;  %s192_s26 = scalar_lea.sflag (!%p999_p8), [#allocation3], %s1066_s11 }
  0x38   : > { %s195_s27 = scalar_lea.vmem (!%p999_p8), [#allocation2], %s633_s4  ;;  %p1169_p10 = scmp.ne.s32.totalorder (!%p999_p8), %s1160_s22, 0 }
  0x3b   : > { %883 = dma.done.wait (%p1169_p10), %s192_s26, 256  }
  0x3c   : > { %885 = vsyncadd (%p1169_p10), %s192_s26, 4294967040 }
  0x3d   : > { %887 = dma.done.wait (%p979_p1), [#allocation6], 1536  }
  0x3e   : > { %889 = vsyncadd (%p979_p1), [#allocation6], 4294965760  ;;  %v228_v0 = vlaneseq  ;;  %v246_v2 = vld [vmem:[#allocation5 + $0x38] sm:$0xff]  ;;  %v245_v4 = vld [vmem:[#allocation5 + $0x30] sm:$0xff]  ;;  %vm247_vm1 = vcmask 261120   ;;  %s649_s24 = sshll.u32 %s908_s15, 8 }
  0x3f   : > { %v241_v3 = vld [vmem:[#allocation5 + $0x18] sm:$0xff]  ;;  %668 = vmatprep.subr.mxu0 %v246_v2  ;;  %v240_v5 = vld [vmem:[#allocation5 + $0x10] sm:$0xff]  ;;  %v244_v6 = vld [vmem:[#allocation5 + $0x28] sm:$0xff]  ;;  %s221_s30 = scalar_lea.vmem [#allocation7], %s633_s4  ;;  %s1099_s21 = scalar_lea.hbm %s1154_s3, %s649_s24 }
  0x40   : > { %v229_v1 = vshrl.u32 %v228_v0, 7  ;;  %679 = vmatprep.subr.mxu1 %v241_v3  ;;  %669 = vmatpush3.msra.mxu0 %v246_v2  ;;  %v239_v7 = vld [vmem:[#allocation5 + $0x8] sm:$0xff]  ;;  %v224_v8 = vld [vmem:[%s195_s27] sm:$0xff]  ;;  %v414_v18 = vld [vmem:[#allocation5 + $0x58] sm:$0xff]  ;;  %s527_s29 = sshll.u32 %s221_s30, 4  ;;  %s512_s15 = scalar_lea.sflag [#allocation4], %s1066_s11  ;;  %s1101_s29 = int_to_ptr.vmem [resolvable:$true] %s527_s29 }
  0x41   : > { %680 = vmatpush3.msra.mxu1 %v241_v3  ;;  %670 = vmatprep.subr.mxu0 %v245_v4  ;;  %v226_v9 = vrot.slane %v224_v8, 7  ;;  %v225_v10 = vld [vmem:[%s195_s27 + $0x8] sm:$0xff]  ;;  %v243_v11 = vld [vmem:[#allocation5 + $0x20] sm:$0xff]  ;;  %v233_v13 = vrot.slane %v224_v8, 1  ;;  %v413_v20 = vld [vmem:[#allocation5 + $0x50] sm:$0xff]  ;;  %s832_s10 = scalar_lea.vmem %s1101_s29, 256 }
  0x42   : > { %681 = vmatprep.subr.mxu1 %v240_v5  ;;  %vm230_vm0 = vcmp.lt.s32.totalorder %v229_v1, 1  ;;  %671 = vmatpush3.msra.mxu0 %v245_v4  ;;  %v238_v12 = vld [vmem:[#allocation5] sm:$0xff]  ;;  %v227_v14 = vrot.slane %v225_v10, 7  ;;  %v234_v15 = vrot.slane %v225_v10, 1  ;;  %vm235_vm2 = vcmp.lt.s32.totalorder %v229_v1, 7  ;;  %v412_v21 = vld [vmem:[#allocation5 + $0x48] sm:$0xff]  ;;  %p833_p1 = scmp.ne.s32.totalorder %s1101_s29, %s832_s10 }
  0x43   : > { %682 = vmatpush3.msra.mxu1 %v240_v5  ;;  %672 = vmatprep.subr.mxu0 %v244_v6  ;;  %v411_v22 = vld [vmem:[#allocation5 + $0x40] sm:$0xff]  ;;  %s922_s7 = smov [#allocation7]  }
  0x44   : > { %683 = vmatprep.subr.mxu1 %v239_v7  ;;  %673 = vmatpush3.msra.mxu0 %v244_v6  ;;  %v232_v16 = vsel %vm230_vm0, %v227_v14, %v226_v9  ;;  %v231_v17 = vsel %vm230_vm0, %v226_v9, %v227_v14  ;;  %v236_v19 = vsel %vm235_vm2, %v233_v13, %v234_v15  ;;  %v642_v30 = vld [vmem:[%s1153_s2] ss:$0 sm:$0xff]  ;;  %p834_p8 = pnand %p833_p1, %p1035_p13  ;;  %s836_s25 = sshll.u32 %s922_s7, 4  ;;  %s837_s25 = int_to_ptr.vmem [resolvable:$false] %s836_s25 }
  0x45   : > { %684 = vmatpush3.msra.mxu1 %v239_v7  ;;  %674 = vmatprep.subr.mxu0 %v243_v11  ;;  %v237_v23 = vsel %vm235_vm2, %v234_v15, %v233_v13  ;;  %s838_s8 = scalar_lea.vmem %s837_s25, 512  ;;  %p839_p0 = scmp.lt.s32.totalorder %s1101_s29, %s837_s25 }
  0x46   : > { %685 = vmatprep.subr.mxu1 %v238_v12  ;;  %675 = vmatpush3.msra.mxu0 %v243_v11  ;;  %p835_p12 = pneg %p834_p8  ;;  %p840_p2 = scmp.lt.s32.totalorder %s838_s8, %s832_s10 }
  0x47   : > { %676 = vmatprep.mubr.msk.f32.mxu0 %vm247_vm1, %v224_v8  ;;  %686 = vmatpush3.msra.mxu1 %v238_v12 }
  0x48   : > { %687 = vmatprep.mubr.msk.f32.mxu1 %vm247_vm1, %v232_v16  ;;  %677 = vmatmul.mubr.msk.f32.vlgmr.msra.gmra.mxu0 %vm247_vm1, %v225_v10  ;;  %p841_p3 = por %p840_p2, %p839_p0 }
  0x49   : > { %688 = vmatmul.mubr.msk.f32.vlgmr.msra.gmra.mxu1 %vm247_vm1, %v231_v17  ;;  %690 = vmatprep.subr.mxu0 %v414_v18 }
  0x4a   : > { %698 = vmatprep.mubr.msk.f32.mxu0 %vm247_vm1, %v236_v19  ;;  %691 = vmatpush3.msra.mxu0 %v414_v18  ;;  %p842_p5 = pnand %p841_p3, %p835_p12 }
  0x4b   : > { %692 = vmatprep.subr.mxu0 %v413_v20 }
  0x4c   : > { %693 = vmatpush3.msra.mxu0 %v413_v20 }
  0x4d   : > { %694 = vmatprep.subr.mxu0 %v412_v21 }
  0x4e   : > { %695 = vmatpush3.msra.mxu0 %v412_v21 }
  0x4f   : > { %696 = vmatprep.subr.mxu0 %v411_v22 }
  0x50   : > { %697 = vmatpush3.msra.mxu0 %v411_v22 }
  0x51   : > { %699 = vmatmul.mubr.msk.f32.vlgmr.msra.gmra.mxu0 %vm247_vm1, %v237_v23 }
 0x108   : > { %v678_v24 = vpop.f32.mrf.mxu0 }
 0x109   : > { %v689_v25 = vpop.f32.mrf.mxu1 }
 0x10a   : > { %v320_v26 = vpop.f32.mrf.mxu0  ;;  %v407_v28 = vadd.f32 %v689_v25, %v678_v24 }
 0x10b   : > { %v401_v27 = vpop.f32.mrf.mxu1 }
 0x10c   : > { %v402_v31 = vadd.f32 %v401_v27, %v320_v26 }
 0x111   : > { %v700_v29 = vpop.f32.mrf.mxu0 }
 0x112   : > { %v497_v32 = vadd.f32 %v700_v29, %v407_v28 }
 0x113   : > { %v487_v33 = vpop.f32.mrf.mxu0 }
 0x114   : > { %v506_v34 = vadd.f32 %v642_v30, %v497_v32  ;;  %v496_v35 = vadd.f32 %v487_v33, %v402_v31 }
 0x116   : > { %v508_v36 = vmax.f32 %v506_v34, 0.0  ;;  %v505_v37 = vadd.f32 %v642_v30, %v496_v35 }
 0x118   : > { %510 = vst.msk [vmem:[%s221_s30 + $0x8] sm:$0xff] %vm247_vm1, %v508_v36  ;;  %v507_v38 = vmax.f32 %v505_v37, 0.0 }
 0x11a   : > { %509 = vst.msk [vmem:[%s221_s30] sm:$0xff] %vm247_vm1, %v507_v38 }
 0x11b   : > { %845 = shalt.err (!%p842_p5)
}
 0x11c   : > { %s846_s18 = scalar_lea.hbm %s1099_s21, 256  ;;  %s850_s27 = scalar_lea.hbm %s1154_s3, 512 }
 0x11d   : > { %p847_p7 = scmp.ne.s32.totalorder %s1099_s21, %s846_s18  ;;  %p851_p9 = scmp.lt.s32.totalorder %s1099_s21, %s1154_s3 }
 0x11e   : > { %p852_p11 = scmp.lt.s32.totalorder %s850_s27, %s846_s18 }
 0x11f   : > { %p848_p4 = pnand %p847_p7, %p1035_p13 }
 0x120   : > { %p853_p10 = por %p852_p11, %p851_p9 }
 0x121   : > { %p849_p6 = pneg %p848_p4 }
 0x123   : > { %p854_p1 = pnand %p853_p10, %p849_p6 }
 0x125   : > { %857 = shalt.err (!%p854_p1)
}
 0x126   : > { %s923_s24 = smov 128   ;;  %s924_s30 = smov 8  }
 0x127   : > { %707 = dma.vmem_to_hbm [thread:$0]  (%p1035_p13), %s1101_s29, 256, %s1099_s21, %s512_s15, %s923_s24, %s923_s24, %s924_s30  }
 0x128 PF: > { %s542_s5 = sand.u32 1, %s896_s12   ;;  %p1170_p8 = scmp.ne.s32.totalorder %s1161_s23, 0 }
 0x129   : > { %p1171_p12 = scmp.ge.s32.totalorder %s916_s17, 2  ;;  %s543_s6 = scalar_lea.sflag [#allocation4], %s542_s5 }
 0x12b   : > { %p718_p0 = pnand %p1171_p12, %p1170_p8 }
 0x12d   : > { %p719_p2 = pneg %p718_p0 }
 0x12f   : > { %891 = dma.done.wait (%p719_p2), %s543_s6, 256  }
 0x130   : > { %893 = vsyncadd (%p719_p2), %s543_s6, 4294967040  ;;  %s20_s17 = sadd.s32 1, %s916_s17   ;;  %s1172_s12 = smov %s900_s13 }
 0x131   : > { %p17_p3 = scmp.ge.s32.totalorder %s20_s17, 4   ;;  %s1173_s13 = smov %s904_s14 }
 0x132   : > { %s1174_s14 = smov %s1044_s19  ;;  %s1175_s15 = smov %s912_s16 }
 0x133   : > { %s1176_s16 = smov %s1178_s28  ;;  %19 = sbr.rel (!%p17_p3) target bundleno = 7 (0x7), region = 83 }
 0x138   :  { %548 = vsyncpa [#allocation3], 1 }
 0x139   :  { %550 = vsyncpa [#allocation3 + $0x1], 1 }
 0x13a   :  { %551 = vsyncpa [#allocation6], 1 }
 0x13b   :  { %552 = vsyncpa [#allocation4], 1 }
 0x13c   :  { %554 = vsyncpa [#allocation4 + $0x1], 1 }

</bundles_post_ra>
